<compile_context>
chip_gen: v5e
topology: v5e:2x2
jax: 0.10.0
libtpu: 0.0.40
codegen_flags: <defaults>
</compile_context>

<pallas_src>
import numpy as np
from typing import NamedTuple

import jax
import jax.numpy as jnp
from jax import lax
from jax.experimental import pallas as pl
from jax.experimental.pallas import tpu as pltpu

NUM_FIELD_TYPES = 6     # stand-in for field_types.size
_LANE = 128
_SUBLANE = 8


def _ru(x, m):
    return (x + m - 1) // m * m


def _vmem():
    return pl.BlockSpec(memory_space=pltpu.MemorySpace.VMEM)


class Dims(NamedTuple):
    hidden_dim: int
    decoder_hidden_dim: int
    feat_dim: int


# ----------------------------------------------------------------------------
# Single fused Pallas kernel:
#   gather(packed schema rows) -> feature-embedding lookups -> concat(K=128)
#   -> W1 + ReLU -> W2   (schema encoder feedforward)
#   plus the decoder-init hidden_proj linear, all in one call.
# ----------------------------------------------------------------------------

def _fused_encoder_kernel(x_ref, gidx_ref, vmask_ref,
                          pk_ref, fk_ref, ft_ref, fmask_ref,
                          pk_emb_ref, fk_emb_ref, ft_emb_ref,
                          w1_ref, b1_ref, w2_ref, b2_ref,
                          last_ref, wp_ref, bp_ref,
                          schema_o_ref, proj_o_ref):
    n_rows = gidx_ref.shape[0]          # padded B*L (multiple of 8)
    n_src = x_ref.shape[0]              # padded B*S (multiple of 8)
    n_ft = ft_emb_ref.shape[0]          # field-type table rows (padded to 8)

    # ---- on-device packed-row gather (one-hot @ x); pad rows -> 0 ----------
    src_iota = lax.broadcasted_iota(jnp.int32, (n_rows, n_src), 1)
    onehot = jnp.where(src_iota == gidx_ref[...], 1.0, 0.0) * vmask_ref[...]
    h = jnp.dot(onehot, x_ref[...], preferred_element_type=jnp.float32)

    # ---- fused feature-embedding lookups (field-masked) ---------------------
    fm = fmask_ref[...]                                          # [n_rows, 1]
    pk_e = jnp.where(pk_ref[...] == 0,
                     pk_emb_ref[0:1, :], pk_emb_ref[1:2, :]) * fm
    fk_e = jnp.where(fk_ref[...] == 0,
                     fk_emb_ref[0:1, :], fk_emb_ref[1:2, :]) * fm
    ft_iota = lax.broadcasted_iota(jnp.int32, (n_rows, n_ft), 1)
    ft_oh = jnp.where(ft_iota == ft_ref[...], 1.0, 0.0)
    ft_e = jnp.dot(ft_oh, ft_emb_ref[...],
                   preferred_element_type=jnp.float32) * fm

    # ---- single K=128 concat matmul (fills one MXU pass) + ReLU + W2 -------
    cat = jnp.concatenate([h, pk_e, fk_e, ft_e], axis=1)         # [n_rows, 128]
    mid = jnp.maximum(
        jnp.dot(cat, w1_ref[...], preferred_element_type=jnp.float32)
        + b1_ref[...], 0.0)
    schema_o_ref[...] = (jnp.dot(mid, w2_ref[...],
                                 preferred_element_type=jnp.float32)
                         + b2_ref[...])

    # ---- fused decoder-init hidden_proj (no separate pallas_call) ----------
    proj_o_ref[...] = (jnp.dot(last_ref[...], wp_ref[...],
                               preferred_element_type=jnp.float32)
                       + bp_ref[...])


# ----------------------------------------------------------------------------
# Parameter prep (one-time, outside the hot path): lane-dense padded weights,
# biases pre-shaped [1, Dout], field-type table padded to 8 sublanes.
# ----------------------------------------------------------------------------

def prepare_params(raw, dims):
    H, DEC, FEAT = dims.hidden_dim, dims.decoder_hidden_dim, dims.feat_dim
    p = {}
    p['pk_emb'] = raw['pk_emb']
    p['fk_emb'] = raw['fk_emb']
    p['ft_emb_p'] = (jnp.zeros((_SUBLANE, FEAT), jnp.float32)
                     .at[:raw['ft_emb'].shape[0]].set(raw['ft_emb']))
    p['ff_w1'] = raw['ff_w1']                                   # [H+3*FEAT, H]
    p['ff_b1'] = raw['ff_b1'].reshape(1, H)
    p['ff_w2_p'] = (jnp.zeros((H, _LANE), jnp.float32)
                    .at[:, :H].set(raw['ff_w2']))
    p['ff_b2_p'] = (jnp.zeros((1, _LANE), jnp.float32)
                    .at[0, :H].set(raw['ff_b2']))
    p['hidden_proj_w_p'] = (jnp.zeros((H, _LANE), jnp.float32)
                            .at[:, :2 * DEC].set(raw['hidden_proj_w']))
    p['hidden_proj_b_p'] = (jnp.zeros((1, _LANE), jnp.float32)
                            .at[0, :2 * DEC].set(raw['hidden_proj_b']))
    return p


# ----------------------------------------------------------------------------
# Forward pass (jit-compatible; all glue is XLA, all matmul work is one kernel)
# ----------------------------------------------------------------------------

def schema_aware_transformer_encoder_forward(params, dims, inputs_embedded,
                                             input_masks, text_masks,
                                             schema_masks, feature_ids):
    H, DEC = dims.hidden_dim, dims.decoder_hidden_dim
    B, S, _ = inputs_embedded.shape
    T = text_masks.shape[1]

    # use_lstm_encoder=False
    encoder_base_hiddens = inputs_embedded                       # [B, S, H]
    text_hiddens = encoder_base_hiddens[:, 1:T + 1, :]           # [B, T, H]

    pk_ids = feature_ids[0][0]
    fk_ids = feature_ids[1][0]
    ft_ids = feature_ids[2][0]
    table_masks = feature_ids[3][0]
    L = pk_ids.shape[1]

    # ops.batch_binary_lookup_3D index computation, fully on-device (jit-safe)
    pos = jnp.arange(S, dtype=jnp.int32)
    sort_key = jnp.where(schema_masks == 1, pos[None, :], pos[None, :] + S)
    order = jnp.argsort(sort_key, axis=1)[:, :L]                 # packed src pos
    counts = jnp.sum(schema_masks, axis=1).astype(jnp.int32)
    pad_mask = jnp.arange(L, dtype=jnp.int32)[None, :] >= counts[:, None]
    schema_hidden_masks = pad_mask.astype(jnp.int32)             # padding -> 1
    valid = jnp.logical_not(pad_mask).astype(jnp.float32).reshape(B * L)
    flat_gather = (jnp.arange(B, dtype=jnp.int32)[:, None] * S
                   + order).reshape(B * L)

    N = B * L
    Npad = _ru(N, _SUBLANE)
    BS = B * S
    BSpad = _ru(BS, _SUBLANE)
    Bpad = _ru(B, _SUBLANE)

    def _col(v, npad, dtype):
        return jnp.zeros((npad, 1), dtype).at[:v.shape[0], 0].set(v.astype(dtype))

    x_flat = (jnp.zeros((BSpad, H), jnp.float32)
              .at[:BS].set(encoder_base_hiddens.reshape(BS, H)))
    gidx = _col(flat_gather, Npad, jnp.int32)
    vmask = _col(valid, Npad, jnp.float32)
    pk_c = _col(pk_ids.reshape(N), Npad, jnp.int32)
    fk_c = _col(fk_ids.reshape(N), Npad, jnp.int32)
    ft_c = _col(ft_ids.reshape(N), Npad, jnp.int32)
    fmask = _col((1 - table_masks).reshape(N), Npad, jnp.float32)
    last_text = (jnp.zeros((Bpad, H), jnp.float32)
                 .at[:B].set(text_hiddens[:, -1, :]))

    schema_pad, proj_pad = pl.pallas_call(
        _fused_encoder_kernel,
        out_shape=(jax.ShapeDtypeStruct((Npad, _LANE), jnp.float32),
                   jax.ShapeDtypeStruct((Bpad, _LANE), jnp.float32)),
        in_specs=[_vmem()] * 17,
        out_specs=(_vmem(), _vmem()),
    )(x_flat, gidx, vmask, pk_c, fk_c, ft_c, fmask,
      params['pk_emb'], params['fk_emb'], params['ft_emb_p'],
      params['ff_w1'], params['ff_b1'], params['ff_w2_p'], params['ff_b2_p'],
      last_text, params['hidden_proj_w_p'], params['hidden_proj_b_p'])

    schema_hiddens = schema_pad[:N, :H].reshape(B, L, H)
    proj = proj_pad[:B, :2 * DEC][None, :, :]                    # [1, B, 2*DEC]
    hidden = (proj[:, :, :DEC], proj[:, :, DEC:])

    # transformer_output_value_masks is None
    constant_hiddens = text_hiddens
    constant_hidden_masks = text_masks

    # TODO(synk): ops.merge_padded_seq_3D and the SelfAttentionLayer branch are
    # not exercised in this configuration (return_separate_hiddens=True,
    # num_const_attn_layers=0, transformer_output_value_masks=None).
    return (constant_hiddens, constant_hidden_masks,
            schema_hiddens, schema_hidden_masks, hidden)


# ----------------------------------------------------------------------------
# main
# ----------------------------------------------------------------------------

if __name__ == "__main__":
    B, S, H = 2, 16, 32          # batch, seq_len, hidden_dim (= input_dim)
    DEC = 32                     # decoder_hidden_dim
    FEAT = 32                    # feat_dim (SchemaEncoder built with hidden_dim)
    T = 8                        # max_text_seq_len
    dims = Dims(H, DEC, FEAT)

    key = jax.random.PRNGKey(0)
    ks = jax.random.split(key, 12)

    inputs_embedded = jax.random.normal(ks[0], (B, S, H), jnp.float32)
    input_masks = jnp.zeros((B, S), jnp.int32)
    text_masks = jnp.zeros((B, T), jnp.int32)

    schema_masks_np = np.zeros((B, S), np.int32)
    schema_masks_np[0, 10:16] = 1        # 6 schema tokens
    schema_masks_np[1, 11:16] = 1        # 5 schema tokens (1 pad slot)
    schema_masks = jnp.asarray(schema_masks_np)
    L = 6

    pk_ids = jax.random.randint(ks[1], (B, L), 0, 2)
    fk_ids = jax.random.randint(ks[2], (B, L), 0, 2)
    ft_ids = jax.random.randint(ks[3], (B, L), 0, NUM_FIELD_TYPES)
    table_masks = jax.random.randint(ks[4], (B, L), 0, 2)
    feature_ids = [(pk_ids, None), (fk_ids, None), (ft_ids, None),
                   (table_masks, None)]

    raw = dict(
        hidden_proj_w=0.05 * jax.random.normal(ks[5], (H, 2 * DEC), jnp.float32),
        hidden_proj_b=0.05 * jax.random.normal(ks[6], (2 * DEC,), jnp.float32),
        pk_emb=jax.random.normal(ks[7], (2, FEAT), jnp.float32),
        fk_emb=jax.random.normal(ks[8], (2, FEAT), jnp.float32),
        ft_emb=jax.random.normal(ks[9], (NUM_FIELD_TYPES, FEAT), jnp.float32),
        ff_w1=0.05 * jax.random.normal(ks[10], (H + 3 * FEAT, H), jnp.float32),
        ff_b1=jnp.zeros((H,), jnp.float32),
        ff_w2=0.05 * jax.random.normal(ks[11], (H, H), jnp.float32),
        ff_b2=jnp.zeros((H,), jnp.float32),
    )
    params = prepare_params(raw, dims)

    fwd = jax.jit(schema_aware_transformer_encoder_forward, static_argnums=(1,))
    out = fwd(params, dims, inputs_embedded, input_masks, text_masks,
              schema_masks, feature_ids)
    jax.block_until_ready(out)
    const_h, const_m, schema_h, schema_m, hidden = out

    # --- pure reference check (numpy, mirrors the PyTorch module) -----------
    base = np.asarray(inputs_embedded)
    text_h_ref = base[:, 1:T + 1, :]
    proj_ref = (text_h_ref[:, -1, :] @ np.asarray(raw['hidden_proj_w'])
                + np.asarray(raw['hidden_proj_b']))
    hidden_ref = (proj_ref[None, :, :DEC], proj_ref[None, :, DEC:])

    sc_h = np.zeros((B, L, H), np.float32)        # batch_binary_lookup_3D ref
    sc_m = np.ones((B, L), np.int32)
    m_np = np.asarray(schema_masks)
    for b in range(B):
        idx = np.nonzero(m_np[b])[0]
        sc_h[b, :len(idx)] = base[b, idx]
        sc_m[b, :len(idx)] = 0

    fm = (1 - np.asarray(table_masks)).astype(np.float32)[..., None]
    pk_e = np.asarray(raw['pk_emb'])[np.asarray(pk_ids)] * fm
    fk_e = np.asarray(raw['fk_emb'])[np.asarray(fk_ids)] * fm
    ft_e = np.asarray(raw['ft_emb'])[np.asarray(ft_ids)] * fm
    cat = np.concatenate([sc_h, pk_e, fk_e, ft_e], axis=2)
    mid = np.maximum(cat @ np.asarray(raw['ff_w1']) + np.asarray(raw['ff_b1']), 0.0)
    schema_ref = mid @ np.asarray(raw['ff_w2']) + np.asarray(raw['ff_b2'])

    np.testing.assert_allclose(np.asarray(hidden[0]), hidden_ref[0],
                               rtol=1e-5, atol=1e-5)
    np.testing.assert_allclose(np.asarray(hidden[1]), hidden_ref[1],
                               rtol=1e-5, atol=1e-5)
    np.testing.assert_allclose(np.asarray(schema_h), schema_ref,
                               rtol=1e-5, atol=1e-5)
    np.testing.assert_allclose(np.asarray(const_h), text_h_ref,
                               rtol=1e-6, atol=1e-6)
    np.testing.assert_array_equal(np.asarray(schema_m), sc_m)
    np.testing.assert_array_equal(np.asarray(const_m), np.asarray(text_masks))

    print("KERNEL_OK")
</pallas_src>

<mosaic_0001>
module attributes {stable_mosaic.version = 11 : i64} {
  func.func @_fused_encoder_kernel(%arg0: memref<32x32xf32, #tpu.memory_space<vmem>>, %arg1: memref<16x1xi32, #tpu.memory_space<vmem>>, %arg2: memref<16x1xf32, #tpu.memory_space<vmem>>, %arg3: memref<16x1xi32, #tpu.memory_space<vmem>>, %arg4: memref<16x1xi32, #tpu.memory_space<vmem>>, %arg5: memref<16x1xi32, #tpu.memory_space<vmem>>, %arg6: memref<16x1xf32, #tpu.memory_space<vmem>>, %arg7: memref<2x32xf32, #tpu.memory_space<vmem>>, %arg8: memref<2x32xf32, #tpu.memory_space<vmem>>, %arg9: memref<8x32xf32, #tpu.memory_space<vmem>>, %arg10: memref<128x32xf32, #tpu.memory_space<vmem>>, %arg11: memref<1x32xf32, #tpu.memory_space<vmem>>, %arg12: memref<32x128xf32, #tpu.memory_space<vmem>>, %arg13: memref<1x128xf32, #tpu.memory_space<vmem>>, %arg14: memref<8x32xf32, #tpu.memory_space<vmem>>, %arg15: memref<32x128xf32, #tpu.memory_space<vmem>>, %arg16: memref<1x128xf32, #tpu.memory_space<vmem>>, %arg17: memref<16x128xf32, #tpu.memory_space<vmem>>, %arg18: memref<8x128xf32, #tpu.memory_space<vmem>>) attributes {dimension_semantics = [], scalar_prefetch = 0 : i64, scratch_operands = 0 : i64, tpu.core_type = #tpu.core_type<tc>} {
    %0 = tpu.iota {dimensions = array<i32: 1>} : vector<16x32xi32>
    %c0 = arith.constant 0 : index
    %c0_0 = arith.constant 0 : index
    %1 = vector.load %arg1[%c0, %c0_0] : memref<16x1xi32, #tpu.memory_space<vmem>>, vector<16x1xi32>
    %2 = vector.broadcast %1 : vector<16x1xi32> to vector<16x32xi32>
    %3 = arith.cmpi eq, %0, %2 : vector<16x32xi32>
    %cst = arith.constant 1.000000e+00 : f32
    %cst_1 = arith.constant 0.000000e+00 : f32
    %4 = vector.broadcast %cst : f32 to vector<16x32xf32>
    %5 = vector.broadcast %cst_1 : f32 to vector<16x32xf32>
    %6 = arith.select %3, %4, %5 : vector<16x32xi1>, vector<16x32xf32>
    %c0_2 = arith.constant 0 : index
    %c0_3 = arith.constant 0 : index
    %7 = vector.load %arg2[%c0_2, %c0_3] : memref<16x1xf32, #tpu.memory_space<vmem>>, vector<16x1xf32>
    %8 = vector.broadcast %7 : vector<16x1xf32> to vector<16x32xf32>
    %9 = arith.mulf %6, %8 : vector<16x32xf32>
    %c0_4 = arith.constant 0 : index
    %c0_5 = arith.constant 0 : index
    %10 = vector.load %arg0[%c0_4, %c0_5] : memref<32x32xf32, #tpu.memory_space<vmem>>, vector<32x32xf32>
    %cst_6 = arith.constant dense<0.000000e+00> : vector<16x32xf32>
    %11 = tpu.matmul %9, %10, %cst_6 {dimension_numbers = #tpu.dot_dimension_numbers<[1], [0], [0], [1], [0, 0, 1, 1], [], []>} : vector<16x32xf32>, vector<32x32xf32>, vector<16x32xf32> -> vector<16x32xf32>
    %c0_7 = arith.constant 0 : index
    %c0_8 = arith.constant 0 : index
    %12 = vector.load %arg6[%c0_7, %c0_8] : memref<16x1xf32, #tpu.memory_space<vmem>>, vector<16x1xf32>
    %c0_9 = arith.constant 0 : index
    %c0_10 = arith.constant 0 : index
    %13 = vector.load %arg3[%c0_9, %c0_10] : memref<16x1xi32, #tpu.memory_space<vmem>>, vector<16x1xi32>
    %c0_i32 = arith.constant 0 : i32
    %14 = vector.broadcast %c0_i32 : i32 to vector<16x1xi32>
    %15 = arith.cmpi eq, %13, %14 : vector<16x1xi32>
    %c0_11 = arith.constant 0 : index
    %c0_12 = arith.constant 0 : index
    %16 = vector.load %arg7[%c0_11, %c0_12] : memref<2x32xf32, #tpu.memory_space<vmem>>, vector<1x32xf32>
    %c1 = arith.constant 1 : index
    %c0_13 = arith.constant 0 : index
    %17 = vector.load %arg7[%c1, %c0_13] : memref<2x32xf32, #tpu.memory_space<vmem>>, vector<1x32xf32>
    %18 = vector.shape_cast %15 : vector<16x1xi1> to vector<16x1xi1>
    %19 = vector.broadcast %18 : vector<16x1xi1> to vector<16x32xi1>
    %20 = vector.shape_cast %16 : vector<1x32xf32> to vector<1x32xf32>
    %21 = vector.broadcast %20 : vector<1x32xf32> to vector<16x32xf32>
    %22 = vector.shape_cast %17 : vector<1x32xf32> to vector<1x32xf32>
    %23 = vector.broadcast %22 : vector<1x32xf32> to vector<16x32xf32>
    %24 = arith.select %19, %21, %23 : vector<16x32xi1>, vector<16x32xf32>
    %25 = vector.broadcast %12 : vector<16x1xf32> to vector<16x32xf32>
    %26 = arith.mulf %24, %25 : vector<16x32xf32>
    %c0_14 = arith.constant 0 : index
    %c0_15 = arith.constant 0 : index
    %27 = vector.load %arg4[%c0_14, %c0_15] : memref<16x1xi32, #tpu.memory_space<vmem>>, vector<16x1xi32>
    %c0_i32_16 = arith.constant 0 : i32
    %28 = vector.broadcast %c0_i32_16 : i32 to vector<16x1xi32>
    %29 = arith.cmpi eq, %27, %28 : vector<16x1xi32>
    %c0_17 = arith.constant 0 : index
    %c0_18 = arith.constant 0 : index
    %30 = vector.load %arg8[%c0_17, %c0_18] : memref<2x32xf32, #tpu.memory_space<vmem>>, vector<1x32xf32>
    %c1_19 = arith.constant 1 : index
    %c0_20 = arith.constant 0 : index
    %31 = vector.load %arg8[%c1_19, %c0_20] : memref<2x32xf32, #tpu.memory_space<vmem>>, vector<1x32xf32>
    %32 = vector.shape_cast %29 : vector<16x1xi1> to vector<16x1xi1>
    %33 = vector.broadcast %32 : vector<16x1xi1> to vector<16x32xi1>
    %34 = vector.shape_cast %30 : vector<1x32xf32> to vector<1x32xf32>
    %35 = vector.broadcast %34 : vector<1x32xf32> to vector<16x32xf32>
    %36 = vector.shape_cast %31 : vector<1x32xf32> to vector<1x32xf32>
    %37 = vector.broadcast %36 : vector<1x32xf32> to vector<16x32xf32>
    %38 = arith.select %33, %35, %37 : vector<16x32xi1>, vector<16x32xf32>
    %39 = vector.broadcast %12 : vector<16x1xf32> to vector<16x32xf32>
    %40 = arith.mulf %38, %39 : vector<16x32xf32>
    %41 = tpu.iota {dimensions = array<i32: 1>} : vector<16x8xi32>
    %c0_21 = arith.constant 0 : index
    %c0_22 = arith.constant 0 : index
    %42 = vector.load %arg5[%c0_21, %c0_22] : memref<16x1xi32, #tpu.memory_space<vmem>>, vector<16x1xi32>
    %43 = vector.broadcast %42 : vector<16x1xi32> to vector<16x8xi32>
    %44 = arith.cmpi eq, %41, %43 : vector<16x8xi32>
    %cst_23 = arith.constant 1.000000e+00 : f32
    %cst_24 = arith.constant 0.000000e+00 : f32
    %45 = vector.broadcast %cst_23 : f32 to vector<16x8xf32>
    %46 = vector.broadcast %cst_24 : f32 to vector<16x8xf32>
    %47 = arith.select %44, %45, %46 : vector<16x8xi1>, vector<16x8xf32>
    %c0_25 = arith.constant 0 : index
    %c0_26 = arith.constant 0 : index
    %48 = vector.load %arg9[%c0_25, %c0_26] : memref<8x32xf32, #tpu.memory_space<vmem>>, vector<8x32xf32>
    %cst_27 = arith.constant dense<0.000000e+00> : vector<16x32xf32>
    %49 = tpu.matmul %47, %48, %cst_27 {dimension_numbers = #tpu.dot_dimension_numbers<[1], [0], [0], [1], [0, 0, 1, 1], [], []>} : vector<16x8xf32>, vector<8x32xf32>, vector<16x32xf32> -> vector<16x32xf32>
    %50 = vector.broadcast %12 : vector<16x1xf32> to vector<16x32xf32>
    %51 = arith.mulf %49, %50 : vector<16x32xf32>
    %52 = tpu.concatenate %11, %26, %40, %51 in 1 : vector<16x32xf32>, vector<16x32xf32>, vector<16x32xf32>, vector<16x32xf32> -> vector<16x128xf32>
    %c0_28 = arith.constant 0 : index
    %c0_29 = arith.constant 0 : index
    %53 = vector.load %arg10[%c0_28, %c0_29] : memref<128x32xf32, #tpu.memory_space<vmem>>, vector<128x32xf32>
    %cst_30 = arith.constant dense<0.000000e+00> : vector<16x32xf32>
    %54 = tpu.matmul %52, %53, %cst_30 {dimension_numbers = #tpu.dot_dimension_numbers<[1], [0], [0], [1], [0, 0, 1, 1], [], []>} : vector<16x128xf32>, vector<128x32xf32>, vector<16x32xf32> -> vector<16x32xf32>
    %c0_31 = arith.constant 0 : index
    %c0_32 = arith.constant 0 : index
    %55 = vector.load %arg11[%c0_31, %c0_32] : memref<1x32xf32, #tpu.memory_space<vmem>>, vector<1x32xf32>
    %56 = vector.broadcast %55 : vector<1x32xf32> to vector<16x32xf32>
    %57 = arith.addf %54, %56 : vector<16x32xf32>
    %cst_33 = arith.constant 0.000000e+00 : f32
    %58 = vector.broadcast %cst_33 : f32 to vector<16x32xf32>
    %59 = arith.maximumf %57, %58 : vector<16x32xf32>
    %c0_34 = arith.constant 0 : index
    %c0_35 = arith.constant 0 : index
    %60 = vector.load %arg12[%c0_34, %c0_35] : memref<32x128xf32, #tpu.memory_space<vmem>>, vector<32x128xf32>
    %cst_36 = arith.constant dense<0.000000e+00> : vector<16x128xf32>
    %61 = tpu.matmul %59, %60, %cst_36 {dimension_numbers = #tpu.dot_dimension_numbers<[1], [0], [0], [1], [0, 0, 1, 1], [], []>} : vector<16x32xf32>, vector<32x128xf32>, vector<16x128xf32> -> vector<16x128xf32>
    %c0_37 = arith.constant 0 : index
    %c0_38 = arith.constant 0 : index
    %62 = vector.load %arg13[%c0_37, %c0_38] : memref<1x128xf32, #tpu.memory_space<vmem>>, vector<1x128xf32>
    %63 = vector.broadcast %62 : vector<1x128xf32> to vector<16x128xf32>
    %64 = arith.addf %61, %63 : vector<16x128xf32>
    %c0_39 = arith.constant 0 : index
    %c0_40 = arith.constant 0 : index
    %65 = vector.load %arg17[%c0_39, %c0_40] : memref<16x128xf32, #tpu.memory_space<vmem>>, vector<16x128xf32>
    tpu.vector_store %arg17[%c0_39, %c0_40], %64 {strides = array<i32>} : memref<16x128xf32, #tpu.memory_space<vmem>>, vector<16x128xf32>,
    %c0_41 = arith.constant 0 : index
    %c0_42 = arith.constant 0 : index
    %66 = vector.load %arg14[%c0_41, %c0_42] : memref<8x32xf32, #tpu.memory_space<vmem>>, vector<8x32xf32>
    %c0_43 = arith.constant 0 : index
    %c0_44 = arith.constant 0 : index
    %67 = vector.load %arg15[%c0_43, %c0_44] : memref<32x128xf32, #tpu.memory_space<vmem>>, vector<32x128xf32>
    %cst_45 = arith.constant dense<0.000000e+00> : vector<8x128xf32>
    %68 = tpu.matmul %66, %67, %cst_45 {dimension_numbers = #tpu.dot_dimension_numbers<[1], [0], [0], [1], [0, 0, 1, 1], [], []>} : vector<8x32xf32>, vector<32x128xf32>, vector<8x128xf32> -> vector<8x128xf32>
    %c0_46 = arith.constant 0 : index
    %c0_47 = arith.constant 0 : index
    %69 = vector.load %arg16[%c0_46, %c0_47] : memref<1x128xf32, #tpu.memory_space<vmem>>, vector<1x128xf32>
    %70 = vector.broadcast %69 : vector<1x128xf32> to vector<8x128xf32>
    %71 = arith.addf %68, %70 : vector<8x128xf32>
    %c0_48 = arith.constant 0 : index
    %c0_49 = arith.constant 0 : index
    %72 = vector.load %arg18[%c0_48, %c0_49] : memref<8x128xf32, #tpu.memory_space<vmem>>, vector<8x128xf32>
    tpu.vector_store %arg18[%c0_48, %c0_49], %71 {strides = array<i32>} : memref<8x128xf32, #tpu.memory_space<vmem>>, vector<8x128xf32>,
    return
  }
}

</mosaic_0001>

<bundles_post_ra>
// kernel: schema_aware_transformer_encoder_forward.1
= control target key start
LH: loop header
LB: loop body
LE: loop exit
PB: predicated region body
PF: predicated region fallthrough
CT: control target
= control target key end

     0   :  { %v400_v0 = vmov 0   ;;  %v58_v22 = vlaneseq  ;;  %vm189_vm4 = vcmask 64512   ;;  %v401_v27 = vmov 0.0   ;;  %s665_s5 = inlined_call_operand.vmem [shape: s32[16,1], index: 5, kind: input, shape index: {}]   ;;  %s666_s1 = inlined_call_operand.vmem [shape: s32[16,1], index: 1, kind: input, shape index: {}]   ;;  %s667_s2 = inlined_call_operand.vmem [shape: f32[16,1], index: 2, kind: input, shape index: {}]   ;;  %s668_s7 = inlined_call_operand.vmem [shape: f32[2,32], index: 7, kind: input, shape index: {}]   ;;  %s669_s8 = inlined_call_operand.vmem [shape: f32[2,32], index: 8, kind: input, shape index: {}]   ;;  %s670_s3 = inlined_call_operand.vmem [shape: s32[16,1], index: 3, kind: input, shape index: {}]   ;;  %s671_s4 = inlined_call_operand.vmem [shape: s32[16,1], index: 4, kind: input, shape index: {}]   ;;  %s672_s6 = inlined_call_operand.vmem [shape: f32[16,1], index: 6, kind: input, shape index: {}]   ;;  %s673_s9 = inlined_call_operand.vmem [shape: f32[8,32], index: 9, kind: input, shape index: {}]   ;;  %s674_s0 = inlined_call_operand.vmem [shape: f32[32,32], index: 0, kind: input, shape index: {}]   ;;  %s675_s11 = inlined_call_operand.vmem [shape: f32[1,32], index: 11, kind: input, shape index: {}]   ;;  %s676_s10 = inlined_call_operand.vmem [shape: f32[128,32], index: 10, kind: input, shape index: {}]   ;;  %s677_s12 = inlined_call_operand.vmem [shape: f32[32,128], index: 12, kind: input, shape index: {}]   ;;  %s678_s13 = inlined_call_operand.vmem [shape: f32[1,128], index: 13, kind: input, shape index: {}]   ;;  %s679_s15 = inlined_call_operand.vmem [shape: f32[32,128], index: 15, kind: input, shape index: {}]   ;;  %s680_s14 = inlined_call_operand.vmem [shape: f32[8,32], index: 14, kind: input, shape index: {}]   ;;  %s681_s16 = inlined_call_operand.vmem [shape: f32[1,128], index: 16, kind: input, shape index: {}]   ;;  %s682_s18 = inlined_call_operand.vmem [shape: f32[8,128], index: 18, kind: output, shape index: {1}]   ;;  %s683_s17 = inlined_call_operand.vmem [shape: f32[16,128], index: 17, kind: output, shape index: {0}]  }
   0x1   :  { %687 = sst [smem:[#allocation2_spill]] %s665_s5  ;;  %391 = vset.pattern.permute.xlu1 %v400_v0  ;;  %390 = vset.pattern.permute.xlu0 %v400_v0  ;;  %v122_v6 = vld [vmem:[%s670_s3] sm:$0xff]  ;;  %v123_v11 = vld [vmem:[%s670_s3 + $0x8] sm:$0xff]  ;;  %v89_v18 = vld [vmem:[%s674_s0 + $0x18] sm:$0xff]  ;;  %vm90_vm7 = vcmask 261120   ;;  %vm247_vm14 = vcmask 523264  }
   0x2   :  { %688 = sst [smem:[#allocation3_spill]] %s666_s1  ;;  %392 = vset.pattern.permute.xlu2 %v400_v0  ;;  %v154_v7 = vld [vmem:[%s671_s4] sm:$0xff]  ;;  %vm124_vm0 = vcmp.eq.s32.totalorder %v122_v6, 0  ;;  %v155_v12 = vld [vmem:[%s671_s4 + $0x8] sm:$0xff]  ;;  %vm125_vm2 = vcmp.eq.s32.totalorder %v123_v11, 0  ;;  %v88_v19 = vld [vmem:[%s674_s0 + $0x10] sm:$0xff]  ;;  %109 = vmatpush.msra.mxu0 %v89_v18 }
   0x3   :  { %689 = sst [smem:[#allocation4_spill]] %s667_s2  ;;  %vm156_vm1 = vcmp.eq.s32.totalorder %v154_v7, 0  ;;  %v128_v9 = vsel %vm124_vm0, 1, %v400_v0  ;;  %v120_v13 = vld [vmem:[%s672_s6] sm:$0xff]  ;;  %vm157_vm3 = vcmp.eq.s32.totalorder %v155_v12, 0  ;;  %v129_v14 = vsel %vm125_vm2, 1, %v400_v0 }
   0x4   :  { %s690_s29 = sld [smem:[#allocation2_spill]]  ;;  %v160_v10 = vsel %vm156_vm1, 1, %v400_v0  ;;  %v161_v15 = vsel %vm157_vm3, 1, %v400_v0  ;;  %v121_v16 = vld [vmem:[%s672_s6 + $0x8] sm:$0xff]  ;;  %v188_v17 = vld [vmem:[%s673_s9] sm:$0xff]  ;;  %110 = vmatpush.msra.mxu0 %v88_v19  ;;  %v59_v24 = vand.u32 127, %v58_v22 }
   0x5   :  { %s691_s19 = sld [smem:[#allocation3_spill]]  ;;  %211 = vmatpush.msra.mxu1 %v188_v17  ;;  %v87_v20 = vld [vmem:[%s674_s0 + $0x8] sm:$0xff]  ;;  %v86_v21 = vld [vmem:[%s674_s0] sm:$0xff]  ;;  %s403_s2 = smov 64   ;;  %v268_v55 = vld [vmem:[%s676_s10 + $0x78] sm:$0xff]  ;;  %vm250_vm15 = vcmask 785408  }
   0x6   :  { %s692_s24 = sld [smem:[#allocation4_spill]]  ;;  %111 = vmatpush.msra.mxu0 %v87_v20  ;;  %v393_v36 = vld [vmem:[%s668_s7] ss:$0 sm:$0xff]  ;;  %v394_v38 = vld [vmem:[%s668_s7 + $0x1] ss:$0 sm:$0xff]  ;;  %s402_s7 = smov 32   ;;  %273 = vmatpush.msra.mxu2 %v268_v55 }
   0x7   :  { %v395_v39 = vld [vmem:[%s669_s8] ss:$0 sm:$0xff]  ;;  %v396_v40 = vld [vmem:[%s669_s8 + $0x1] ss:$0 sm:$0xff]  ;;  %v267_v56 = vld [vmem:[%s676_s10 + $0x70] sm:$0xff] }
   0x8   :  { %112 = vmatpush.msra.mxu0 %v86_v21  ;;  %v266_v57 = vld [vmem:[%s676_s10 + $0x68] sm:$0xff]  ;;  %274 = vmatpush.msra.mxu2 %v267_v56  ;;  %v265_v58 = vld [vmem:[%s676_s10 + $0x60] sm:$0xff]  ;;  %v264_v59 = vld [vmem:[%s676_s10 + $0x58] sm:$0xff] }
   0x9   :  { %v263_v60 = vld [vmem:[%s676_s10 + $0x50] sm:$0xff]  ;;  %v262_v61 = vld [vmem:[%s676_s10 + $0x48] sm:$0xff]  ;;  %v261_v62 = vld [vmem:[%s676_s10 + $0x40] sm:$0xff] }
   0xa   :  { %v176_v1 = vld [vmem:[%s690_s29] sm:$0xff]  ;;  %v177_v4 = vld [vmem:[%s690_s29 + $0x8] sm:$0xff]  ;;  %275 = vmatpush.msra.mxu2 %v266_v57  ;;  %v260_v0 = vld [vmem:[%s676_s10 + $0x38] sm:$0xff] }
   0xb   :  { %v60_v2 = vld [vmem:[%s691_s19] sm:$0xff]  ;;  %179 = vperm.xlu0 %390, %v176_v1   ;;  %v61_v3 = vld [vmem:[%s691_s19 + $0x8] sm:$0xff]  ;;  %v256_v6 = vld [vmem:[%s676_s10 + $0x18] sm:$0xff] }
   0xc   :  { %63 = vperm.xlu1 %391, %v60_v2   ;;  %66 = vperm.xlu2 %392, %v61_v3   ;;  %v72_v5 = vld [vmem:[%s692_s24] sm:$0xff]  ;;  %v73_v8 = vld [vmem:[%s692_s24 + $0x8] sm:$0xff]  ;;  %v259_v2 = vld [vmem:[%s676_s10 + $0x30] sm:$0xff] }
   0xd   :  { %276 = vmatpush.msra.mxu2 %v265_v58  ;;  %v258_v3 = vld [vmem:[%s676_s10 + $0x28] sm:$0xff]  ;;  %v301_v11 = vld [vmem:[%s677_s12 + $0x18] sm:$0xff] }
   0xe   :  { %324 = vmatpush.msra.mxu3 %v301_v11 }
   0xf   :  { %277 = vmatpush.msra.mxu2 %v264_v59 }
  0x11   :  { %278 = vmatpush.msra.mxu2 %v263_v60 }
  0x13   :  { %182 = vperm.xlu0 %390, %v177_v4   ;;  %279 = vmatpush.msra.mxu2 %v262_v61  ;;  %v257_v4 = vld [vmem:[%s676_s10 + $0x20] sm:$0xff] }
  0x14   :  { %76 = vperm.xlu1 %391, %v72_v5   ;;  %81 = vperm.xlu2 %392, %v73_v8   ;;  %v255_v8 = vld [vmem:[%s676_s10 + $0x10] sm:$0xff] }
  0x15   :  { %280 = vmatpush.msra.mxu2 %v261_v62 }
  0x17   :  { %281 = vmatpush.msra.mxu2 %v260_v0 }
  0x19   :  { %282 = vmatpush.msra.mxu2 %v259_v2 }
  0x1b   :  { %131 = vperm.xlu0 %390, %v128_v9   ;;  %283 = vmatpush.msra.mxu2 %v258_v3  ;;  %v254_v9 = vld [vmem:[%s676_s10 + $0x8] sm:$0xff] }
  0x1c   :  { %163 = vperm.xlu1 %391, %v160_v10   ;;  %144 = vperm.xlu2 %392, %v120_v13   ;;  %v253_v10 = vld [vmem:[%s676_s10] sm:$0xff] }
  0x1d   :  { %284 = vmatpush.msra.mxu2 %v257_v4 }
  0x1f   :  { %285 = vmatpush.msra.mxu2 %v256_v6 }
  0x21   :  { %286 = vmatpush.msra.mxu2 %v255_v8 }
  0x23   :  { %134 = vperm.xlu0 %390, %v129_v14   ;;  %287 = vmatpush.msra.mxu2 %v254_v9 }
  0x24   :  { %166 = vperm.xlu1 %391, %v161_v15   ;;  %149 = vperm.xlu2 %392, %v121_v16  }
  0x25   :  { %288 = vmatpush.msra.mxu2 %v253_v10 }
  0x66   :  { %v67_v23 = vpop.permute.xlu2 %66 }
  0x67   :  { %vm69_vm8 = vcmp.eq.s32.totalorder %v59_v24, %v67_v23 }
  0x68   :  { %v71_v35 = vsel %vm69_vm8, 1.0, %v401_v27 }
  0x6e   :  { %v82_v29 = vpop.permute.xlu2 %81 }
  0x6f   :  { %v85_v41 = vmul.f32 %v82_v29, %v71_v35  ;;  %v298_v29 = vld [vmem:[%s677_s12] sm:$0xff] }
  0x76   :  { %v145_v37 = vpop.permute.xlu2 %144 }
  0x7d   :  { %v180_v25 = vpop.permute.xlu0 %179 }
  0x7e   :  { %v64_v26 = vpop.permute.xlu1 %63  ;;  %vm184_vm5 = vcmp.eq.s32.totalorder %v59_v24, %v180_v25  ;;  %v150_v48 = vpop.permute.xlu2 %149 }
  0x7f   :  { %v186_v28 = vsel %vm184_vm5, 1.0, %v401_v27  ;;  %vm68_vm6 = vcmp.eq.s32.totalorder %v59_v24, %v64_v26  ;;  %v300_v26 = vld [vmem:[%s677_s12 + $0x10] sm:$0xff] }
  0x80   :  { %380 = vmatmul.msk.f32.vlgmr.msra.gmra.mxu1 %vm189_vm4, %v186_v28  ;;  %v70_v30 = vsel %vm68_vm6, 1.0, %v401_v27  ;;  %325 = vmatpush.msra.mxu3 %v300_v26  ;;  %v341_v28 = vld [vmem:[%s679_s15 + $0x18] sm:$0xff] }
  0x81   :  { %361 = vmatpush.msrb.mxu1 %v341_v28 }
  0x85   :  { %v183_v31 = vpop.permute.xlu0 %182 }
  0x86   :  { %v77_v32 = vpop.permute.xlu1 %76  ;;  %vm185_vm9 = vcmp.eq.s32.totalorder %v59_v24, %v183_v31  ;;  %v339_v31 = vld [vmem:[%s679_s15 + $0x8] sm:$0xff] }
  0x87   :  { %v84_v33 = vmul.f32 %v77_v32, %v70_v30  ;;  %v187_v34 = vsel %vm185_vm9, 1.0, %v401_v27  ;;  %v299_v27 = vld [vmem:[%s677_s12 + $0x8] sm:$0xff]  ;;  %v340_v30 = vld [vmem:[%s679_s15 + $0x10] sm:$0xff]  ;;  %v338_v32 = vld [vmem:[%s679_s15] sm:$0xff] }
  0x88   :  { %381 = vmatmul.msk.f32.gmra.mxu1 %vm189_vm4, %v187_v34  ;;  %326 = vmatpush.msra.mxu3 %v299_v27  ;;  %v397_v34 = vld [vmem:[%s675_s11] ss:$0 sm:$0xff] }
  0x89   :  { %378 = vmatmul.msk.f32.vlgmr.msra.gmra.mxu0 %vm90_vm7, %v84_v33  ;;  %362 = vmatpush.msrb.mxu1 %v340_v30  ;;  %v337_v33 = vld [vmem:[%s680_s14] sm:$0xff] }
  0x8a   :  { %327 = vmatpush.msra.mxu3 %v298_v29 }
  0x8b   :  { %363 = vmatpush.msrb.mxu1 %v339_v31 }
  0x8d   :  { %v132_v42 = vpop.permute.xlu0 %131  ;;  %364 = vmatpush.msrb.mxu1 %v338_v32 }
  0x8e   :  { %v164_v43 = vpop.permute.xlu1 %163  ;;  %vm136_vm10 = vcmp.eq.s32.totalorder %v132_v42, 1 }
  0x8f   :  { %vm168_vm11 = vcmp.eq.s32.totalorder %v164_v43, 1  ;;  %v140_v44 = vsel %vm136_vm10, %v393_v36, %v394_v38 }
  0x90   :  { %v172_v45 = vsel %vm168_vm11, %v395_v39, %v396_v40  ;;  %v152_v46 = vmul.f32 %v145_v37, %v140_v44  ;;  %384 = vmatmul.msk.f32.vlgmr.msrb.gmra.mxu1 %vm90_vm7, %v337_v33  ;;  %v398_v44 = vld [vmem:[%s678_s13] ss:$0 sm:$0xff] }
  0x91   :  { %v174_v47 = vmul.f32 %v172_v45, %v145_v37  ;;  %379 = vmatmul.msk.f32.gmra.mxu0 %vm90_vm7, %v85_v41  ;;  %v399_v41 = vld [vmem:[%s681_s16] ss:$0 sm:$0xff] }
  0x92   :  { %223 = vrot.lane.b32.xlu0 %v152_v46, %s402_s7 }
  0x93   :  { %231 = vrot.lane.b32.xlu1 %v174_v47, %s403_s2 }
  0x95   :  { %v135_v49 = vpop.permute.xlu0 %134 }
  0x96   :  { %v167_v50 = vpop.permute.xlu1 %166  ;;  %vm137_vm12 = vcmp.eq.s32.totalorder %v135_v49, 1 }
  0x97   :  { %vm169_vm13 = vcmp.eq.s32.totalorder %v167_v50, 1  ;;  %v141_v51 = vsel %vm137_vm12, %v393_v36, %v394_v38 }
  0x98   :  { %v173_v52 = vsel %vm169_vm13, %v395_v39, %v396_v40  ;;  %v153_v53 = vmul.f32 %v150_v48, %v141_v51 }
  0x99   :  { %v175_v54 = vmul.f32 %v173_v52, %v150_v48 }
  0x9a   :  { %225 = vrot.lane.b32.xlu0 %v153_v53, %s402_s7  ;;  %s404_s7 = smov 96  }
  0x9b   :  { %233 = vrot.lane.b32.xlu1 %v175_v54, %s403_s2 }
  0xfd   :  { %v213_v63 = vpop.f32.mrf.mxu1 }
  0xfe   :  { %v219_v1 = vmul.f32 %v213_v63, %v145_v37 }
 0x100   :  { %239 = vrot.lane.b32.xlu2 %v219_v1, %s404_s7 }
 0x104   :  { %v224_v12 = vpop.permute.xlu0 %223 }
 0x105   :  { %v216_v5 = vpop.f32.mrf.mxu1  ;;  %v232_v14 = vpop.permute.xlu1 %231 }
 0x106   :  { %v220_v7 = vmul.f32 %v216_v5, %v150_v48  ;;  %v114_v13 = vpop.f32.mrf.mxu0 }
 0x107   :  { %v245_v15 = vsel %vm90_vm7, %v114_v13, %v224_v12 }
 0x108   :  { %241 = vrot.lane.b32.xlu2 %v220_v7, %s404_s7  ;;  %v248_v16 = vsel %vm247_vm14, %v245_v15, %v232_v14 }
 0x10c   :  { %v226_v19 = vpop.permute.xlu0 %225 }
 0x10d   :  { %v234_v22 = vpop.permute.xlu1 %233  ;;  %v366_v42 = vpop.f32.mrf.mxu1 }
 0x10e   :  { %v117_v20 = vpop.f32.mrf.mxu0  ;;  %v367_v43 = vadd.f32 %v399_v41, %v366_v42 }
 0x10f   :  { %v246_v21 = vsel %vm90_vm7, %v117_v20, %v226_v19 }
 0x110   :  { %v249_v23 = vsel %vm247_vm14, %v246_v21, %v234_v22  ;;  %369 = vst [vmem:[%s682_s18] sm:$0xff] %v367_v43 }
 0x15a   :  { %v240_v17 = vpop.permute.xlu2 %239 }
 0x15b   :  { %v251_v18 = vsel %vm250_vm15, %v248_v16, %v240_v17 }
 0x15c   :  { %289 = vmatmul.f32.vlgmr.msra.gmra.mxu2 %v251_v18 }
 0x162   :  { %v242_v24 = vpop.permute.xlu2 %241 }
 0x163   :  { %v252_v25 = vsel %vm250_vm15, %v249_v23, %v242_v24 }
 0x164   :  { %292 = vmatmul.f32.gmra.mxu2 %v252_v25 }
 0x1df   :  { %v290_v35 = vpop.f32.mrf.mxu2 }
 0x1e0   :  { %v291_v36 = vadd.f32 %v397_v34, %v290_v35 }
 0x1e2   :  { %v296_v37 = vmax.f32 %v291_v36, 0.0 }
 0x1e4   :  { %382 = vmatmul.msk.f32.vlgmr.msra.gmra.mxu3 %vm90_vm7, %v296_v37 }
 0x1e7   :  { %v293_v38 = vpop.f32.mrf.mxu2 }
 0x1e8   :  { %v294_v39 = vadd.f32 %v397_v34, %v293_v38 }
 0x1ea   :  { %v297_v40 = vmax.f32 %v294_v39, 0.0 }
 0x1ec   :  { %383 = vmatmul.msk.f32.gmra.mxu3 %vm90_vm7, %v297_v40 }
 0x267   :  { %v329_v45 = vpop.f32.mrf.mxu3 }
 0x268   :  { %v330_v46 = vadd.f32 %v398_v44, %v329_v45 }
 0x26a   :  { %335 = vst [vmem:[%s683_s17] sm:$0xff] %v330_v46 }
 0x26f   :  { %v332_v47 = vpop.f32.mrf.mxu3 }
 0x270   :  { %v333_v48 = vadd.f32 %v398_v44, %v332_v47 }
 0x272   :  { %336 = vst [vmem:[%s683_s17 + $0x8] sm:$0xff] %v333_v48 }

</bundles_post_ra>
